<compile_context>
chip_gen: v7x
topology: tpu7x:2x2x1
jax: 0.10.0
libtpu: 0.0.40
codegen_flags: <defaults>
</compile_context>

<pallas_src>
import jax
import jax.numpy as jnp
from jax.experimental import pallas as pl
from jax.experimental.pallas import tpu as pltpu

# Small, module-consistent shapes (embedding_dim, N, num_actions are ctor args).
B = 2             # batch
E = 128           # embedding_dim
H = 512           # hidden width (fixed to 512 in the module)
N = 16            # number of quantiles
A = 4             # num_actions
NA = N * A        # 64   (q_net output width)
HEAD = 3 * NA     # 192  fused head: [q_net | weight_net.w (xN) | weight_net.b (xN)]


def nc_qrdqn_kernel(x_ref, w1_ref, b1_ref, wh_ref, bh_ref, cs_ref, out_ref):
    bt = out_ref.shape[0]

    # ---- embed_net: Linear(E, 512) + ReLU (bf16 MXU operands, f32 acc) -----
    x = x_ref[...].astype(jnp.bfloat16)
    embed = jnp.dot(x, w1_ref[...],
                    preferred_element_type=jnp.float32) + b1_ref[...]
    embed = jnp.maximum(embed, 0.0)                              # (bt, H) f32

    # ---- fused head: [q_net | w-cols xN | b-cols xN] in ONE matmul ---------
    head = jnp.dot(embed.astype(jnp.bfloat16), wh_ref[...],
                   preferred_element_type=jnp.float32) + bh_ref[...]  # (bt, 192)
    quant = head[:, :NA]                           # col j <-> (n=j//A, a=j%A)
    w_t = jnp.maximum(head[:, NA:2 * NA], 0.0)     # relu(weight[:, 0, :]) per lane
    b_t = head[:, 2 * NA:3 * NA]                   # weight[:, 1, :] per lane

    # ---- numerically-safe softmax over N: per-(b, a) group max -------------
    lane_a = jax.lax.broadcasted_iota(jnp.int32, (bt, NA), 1) % A
    gmax = jnp.zeros((bt, NA), jnp.float32)
    for a in range(A):                             # A is tiny & static
        sel = lane_a == a
        m_a = jnp.max(jnp.where(sel, quant, -jnp.inf), axis=1, keepdims=True)
        gmax = jnp.where(sel, m_a, gmax)
    e = jnp.exp(quant - gmax)                      # in (0, 1]; group max is 1

    # ---- cumsum-over-N and sum-over-N in ONE bf16 MXU matmul ---------------
    # cs_ref = [C | S]: C[i, j] = (i%A == j%A) & (i//A <= j//A); S[i, j] = (i%A == j%A)
    cs = jnp.dot(e.astype(jnp.bfloat16), cs_ref[...],
                 preferred_element_type=jnp.float32)             # (bt, 2*NA)
    probs = cs[:, :NA] / cs[:, NA:]                # cumulative probabilities

    # Lane-dense (bt, N*A) store; wrapper does the .view(B, N, A).
    out_ref[...] = w_t * probs + b_t


def _cumsum_matrix():
    """[C | S] block matrix implementing per-action cumsum / sum over N (bf16, 0/1)."""
    i = jnp.arange(NA)
    same_a = (i[:, None] % A) == (i[None, :] % A)
    le_n = (i[:, None] // A) <= (i[None, :] // A)
    c = (same_a & le_n)
    s = same_a
    return jnp.concatenate([c, s], axis=1).astype(jnp.bfloat16)  # (NA, 2*NA)


def prepare_params(w1, b1, wq, bq, ww, bw):
    """One-time weight preprocessing (hoisted out of the per-call hot path)."""
    w1_bf = w1.astype(jnp.bfloat16)                              # (E, H)
    wh_bf = jnp.concatenate(
        [wq,                                  # q_net columns (n*A + a layout)
         jnp.tile(ww[:, :A], (1, N)),         # weight_net "w" columns, col j -> a=j%A
         jnp.tile(ww[:, A:2 * A], (1, N))],   # weight_net "b" columns, col j -> a=j%A
        axis=1).astype(jnp.bfloat16)                             # (H, 192)
    b1_2d = b1.reshape(1, H).astype(jnp.float32)
    bh_2d = jnp.concatenate(
        [bq, jnp.tile(bw[:A], N), jnp.tile(bw[A:2 * A], N)]
    ).reshape(1, HEAD).astype(jnp.float32)
    return {"w1": w1_bf, "b1": b1_2d, "wh": wh_bf, "bh": bh_2d,
            "cs": _cumsum_matrix()}


def nc_qrdqn_forward(state_embeddings, params):
    """state_embeddings: (batch, E) f32 -> nc_quantiles: (batch, N, A) f32."""
    batch = state_embeddings.shape[0]

    # One block for small batches; 512-row tiles (near HBM roofline, grid >= 2
    # for v7x megacore) for large batches, ragged tail handled by padding.
    bt = batch if batch <= 512 else 512
    padded = pl.cdiv(batch, bt) * bt
    x = state_embeddings
    if padded != batch:
        x = jnp.pad(x, ((0, padded - batch), (0, 0)))
    grid = (padded // bt,)

    out2d = pl.pallas_call(
        nc_qrdqn_kernel,
        out_shape=jax.ShapeDtypeStruct((padded, NA), jnp.float32),
        grid=grid,
        in_specs=[
            pl.BlockSpec((bt, E), lambda i: (i, 0)),         # activations: tiled
            pl.BlockSpec((E, H), lambda i: (0, 0)),          # weights: VMEM-resident
            pl.BlockSpec((1, H), lambda i: (0, 0)),
            pl.BlockSpec((H, HEAD), lambda i: (0, 0)),
            pl.BlockSpec((1, HEAD), lambda i: (0, 0)),
            pl.BlockSpec((NA, 2 * NA), lambda i: (0, 0)),
        ],
        out_specs=pl.BlockSpec((bt, NA), lambda i: (i, 0)),
        compiler_params=pltpu.CompilerParams(
            dimension_semantics=("parallel",)),
    )(x, params["w1"], params["b1"], params["wh"], params["bh"], params["cs"])

    if padded != batch:
        out2d = out2d[:batch]
    # Torch's .view(batch, N, A): row-major split of the (batch, N*A) output.
    return out2d.reshape(batch, N, A)


def nc_qrdqn_reference(x, w1, b1, wq, bq, ww, bw):
    """Pure-JAX (f32) transcription of the PyTorch forward (state_embeddings path)."""
    batch = x.shape[0]
    embed = jax.nn.relu(x @ w1 + b1)
    quantiles = (embed @ wq + bq).reshape(batch, N, A)
    weight = (embed @ ww + bw).reshape(batch, 2, A)
    w = jax.nn.relu(weight[:, 0, :])[:, None, :]
    b = weight[:, 1, :][:, None, :]
    log_probs = jax.nn.log_softmax(quantiles, axis=1)
    probs = jnp.cumsum(jnp.exp(log_probs), axis=1)
    return w * probs + b


if __name__ == "__main__":
    key = jax.random.PRNGKey(0)
    ks = jax.random.split(key, 7)
    # Deterministic synthetic parameters (shapes per module __init__).
    x = jax.random.normal(ks[0], (B, E), jnp.float32)
    w1 = jax.random.normal(ks[1], (E, H), jnp.float32) * 0.05      # embed_net Linear
    b1 = jax.random.normal(ks[2], (H,), jnp.float32) * 0.05
    wq = jax.random.normal(ks[3], (H, N * A), jnp.float32) * 0.05  # q_net
    bq = jax.random.normal(ks[4], (N * A,), jnp.float32) * 0.05
    ww = jax.random.normal(ks[5], (H, 2 * A), jnp.float32) * 0.05  # weight_net
    bw = jax.random.normal(ks[6], (2 * A,), jnp.float32) * 0.05

    params = jax.tree_util.tree_map(jax.block_until_ready,
                                    prepare_params(w1, b1, wq, bq, ww, bw))

    fwd = jax.jit(nc_qrdqn_forward)
    out = fwd(x, params)
    out = jax.block_until_ready(out)

    ref = nc_qrdqn_reference(x, w1, b1, wq, bq, ww, bw)
    assert out.shape == (B, N, A)
    # bf16 MXU operands -> relaxed tolerance vs f32 reference.
    assert jnp.allclose(out, ref, rtol=5e-2, atol=5e-2), "mismatch vs reference"
    print("KERNEL_OK")
</pallas_src>

<mosaic_0001>
module attributes {stable_mosaic.version = 11 : i64} {
  func.func @nc_qrdqn_kernel(%arg0: i32, %arg1: memref<2x128xf32, #tpu.memory_space<vmem>>, %arg2: memref<128x512xbf16, #tpu.memory_space<vmem>>, %arg3: memref<1x512xf32, #tpu.memory_space<vmem>>, %arg4: memref<512x192xbf16, #tpu.memory_space<vmem>>, %arg5: memref<1x192xf32, #tpu.memory_space<vmem>>, %arg6: memref<64x128xbf16, #tpu.memory_space<vmem>>, %arg7: memref<2x64xf32, #tpu.memory_space<vmem>>) attributes {dimension_semantics = [#tpu.dimension_semantics<parallel>], iteration_bounds = array<i64: 1>, scalar_prefetch = 0 : i64, scratch_operands = 0 : i64, tpu.core_type = #tpu.core_type<tc>, window_params = [{transform_indices = @transform_0, window_bounds = array<i64: 2, 128>}, {pipeline_mode = #tpu.pipeline_mode<synchronous>, transform_indices = @transform_1, window_bounds = array<i64: 128, 512>}, {pipeline_mode = #tpu.pipeline_mode<synchronous>, transform_indices = @transform_2, window_bounds = array<i64: 1, 512>}, {pipeline_mode = #tpu.pipeline_mode<synchronous>, transform_indices = @transform_3, window_bounds = array<i64: 512, 192>}, {pipeline_mode = #tpu.pipeline_mode<synchronous>, transform_indices = @transform_4, window_bounds = array<i64: 1, 192>}, {pipeline_mode = #tpu.pipeline_mode<synchronous>, transform_indices = @transform_5, window_bounds = array<i64: 64, 128>}, {transform_indices = @transform_6, window_bounds = array<i64: 2, 64>}]} {
    %c0 = arith.constant 0 : index
    %c0_0 = arith.constant 0 : index
    %0 = vector.load %arg1[%c0, %c0_0] : memref<2x128xf32, #tpu.memory_space<vmem>>, vector<2x128xf32>
    %1 = arith.truncf %0 : vector<2x128xf32> to vector<2x128xbf16>
    %c0_1 = arith.constant 0 : index
    %c0_2 = arith.constant 0 : index
    %2 = vector.load %arg2[%c0_1, %c0_2] : memref<128x512xbf16, #tpu.memory_space<vmem>>, vector<128x512xbf16>
    %cst = arith.constant dense<0.000000e+00> : vector<2x512xf32>
    %3 = tpu.matmul %1, %2, %cst {dimension_numbers = #tpu.dot_dimension_numbers<[1], [0], [0], [1], [0, 0, 1, 1], [], []>} : vector<2x128xbf16>, vector<128x512xbf16>, vector<2x512xf32> -> vector<2x512xf32>
    %c0_3 = arith.constant 0 : index
    %c0_4 = arith.constant 0 : index
    %4 = vector.load %arg3[%c0_3, %c0_4] : memref<1x512xf32, #tpu.memory_space<vmem>>, vector<1x512xf32>
    %5 = vector.broadcast %4 : vector<1x512xf32> to vector<2x512xf32>
    %6 = arith.addf %3, %5 : vector<2x512xf32>
    %cst_5 = arith.constant 0.000000e+00 : f32
    %7 = vector.broadcast %cst_5 : f32 to vector<2x512xf32>
    %8 = arith.maximumf %6, %7 : vector<2x512xf32>
    %9 = arith.truncf %8 : vector<2x512xf32> to vector<2x512xbf16>
    %c0_6 = arith.constant 0 : index
    %c0_7 = arith.constant 0 : index
    %10 = vector.load %arg4[%c0_6, %c0_7] : memref<512x192xbf16, #tpu.memory_space<vmem>>, vector<512x192xbf16>
    %cst_8 = arith.constant dense<0.000000e+00> : vector<2x192xf32>
    %11 = tpu.matmul %9, %10, %cst_8 {dimension_numbers = #tpu.dot_dimension_numbers<[1], [0], [0], [1], [0, 0, 1, 1], [], []>} : vector<2x512xbf16>, vector<512x192xbf16>, vector<2x192xf32> -> vector<2x192xf32>
    %c0_9 = arith.constant 0 : index
    %c0_10 = arith.constant 0 : index
    %12 = vector.load %arg5[%c0_9, %c0_10] : memref<1x192xf32, #tpu.memory_space<vmem>>, vector<1x192xf32>
    %13 = vector.broadcast %12 : vector<1x192xf32> to vector<2x192xf32>
    %14 = arith.addf %11, %13 : vector<2x192xf32>
    %15 = vector.extract_strided_slice %14 {offsets = [0, 0], sizes = [2, 64], strides = [1, 1]} : vector<2x192xf32> to vector<2x64xf32>
    %16 = vector.extract_strided_slice %14 {offsets = [0, 64], sizes = [2, 64], strides = [1, 1]} : vector<2x192xf32> to vector<2x64xf32>
    %cst_11 = arith.constant 0.000000e+00 : f32
    %17 = vector.broadcast %cst_11 : f32 to vector<2x64xf32>
    %18 = arith.maximumf %16, %17 : vector<2x64xf32>
    %19 = vector.extract_strided_slice %14 {offsets = [0, 128], sizes = [2, 64], strides = [1, 1]} : vector<2x192xf32> to vector<2x64xf32>
    %20 = tpu.iota {dimensions = array<i32: 1>} : vector<2x64xi32>
    %c4_i32 = arith.constant 4 : i32
    %c0_i32 = arith.constant 0 : i32
    %21 = arith.cmpi eq, %c4_i32, %c0_i32 : i32
    %c1_i32 = arith.constant 1 : i32
    %22 = arith.select %21, %c1_i32, %c4_i32 : i32
    %23 = vector.broadcast %22 : i32 to vector<2x64xi32>
    %24 = arith.remsi %20, %23 : vector<2x64xi32>
    %c0_i32_12 = arith.constant 0 : i32
    %25 = vector.broadcast %c0_i32_12 : i32 to vector<2x64xi32>
    %26 = arith.cmpi ne, %24, %25 : vector<2x64xi32>
    %c0_i32_13 = arith.constant 0 : i32
    %27 = vector.broadcast %c0_i32_13 : i32 to vector<2x64xi32>
    %28 = arith.cmpi slt, %24, %27 : vector<2x64xi32>
    %c0_i32_14 = arith.constant 0 : i32
    %29 = arith.cmpi slt, %22, %c0_i32_14 : i32
    %30 = vector.broadcast %29 : i1 to vector<2x64xi1>
    %31 = vector.broadcast %30 : vector<2x64xi1> to vector<2x64xi1>
    %32 = arith.xori %28, %31 : vector<2x64xi1>
    %33 = arith.andi %32, %26 : vector<2x64xi1>
    %34 = vector.broadcast %22 : i32 to vector<2x64xi32>
    %35 = arith.addi %24, %34 : vector<2x64xi32>
    %36 = arith.select %33, %35, %24 : vector<2x64xi1>, vector<2x64xi32>
    %cst_15 = arith.constant 0.000000e+00 : f32
    %37 = vector.broadcast %cst_15 : f32 to vector<2x64xf32>
    %c0_i32_16 = arith.constant 0 : i32
    %38 = vector.broadcast %c0_i32_16 : i32 to vector<2x64xi32>
    %39 = arith.cmpi eq, %36, %38 : vector<2x64xi32>
    %cst_17 = arith.constant 0xFF800000 : f32
    %40 = vector.broadcast %cst_17 : f32 to vector<2x64xf32>
    %41 = arith.select %39, %15, %40 : vector<2x64xi1>, vector<2x64xf32>
    %cst_18 = arith.constant dense<0xFF800000> : vector<2xf32>
    %42 = vector.multi_reduction <maximumf>, %41, %cst_18 [1] : vector<2x64xf32> to vector<2xf32>
    %43 = vector.shape_cast %42 : vector<2xf32> to vector<2x1xf32>
    %44 = vector.shape_cast %43 : vector<2x1xf32> to vector<2x1xf32>
    %45 = vector.broadcast %44 : vector<2x1xf32> to vector<2x64xf32>
    %46 = arith.select %39, %45, %37 : vector<2x64xi1>, vector<2x64xf32>
    %c1_i32_19 = arith.constant 1 : i32
    %47 = vector.broadcast %c1_i32_19 : i32 to vector<2x64xi32>
    %48 = arith.cmpi eq, %36, %47 : vector<2x64xi32>
    %cst_20 = arith.constant 0xFF800000 : f32
    %49 = vector.broadcast %cst_20 : f32 to vector<2x64xf32>
    %50 = arith.select %48, %15, %49 : vector<2x64xi1>, vector<2x64xf32>
    %cst_21 = arith.constant dense<0xFF800000> : vector<2xf32>
    %51 = vector.multi_reduction <maximumf>, %50, %cst_21 [1] : vector<2x64xf32> to vector<2xf32>
    %52 = vector.shape_cast %51 : vector<2xf32> to vector<2x1xf32>
    %53 = vector.shape_cast %52 : vector<2x1xf32> to vector<2x1xf32>
    %54 = vector.broadcast %53 : vector<2x1xf32> to vector<2x64xf32>
    %55 = arith.select %48, %54, %46 : vector<2x64xi1>, vector<2x64xf32>
    %c2_i32 = arith.constant 2 : i32
    %56 = vector.broadcast %c2_i32 : i32 to vector<2x64xi32>
    %57 = arith.cmpi eq, %36, %56 : vector<2x64xi32>
    %cst_22 = arith.constant 0xFF800000 : f32
    %58 = vector.broadcast %cst_22 : f32 to vector<2x64xf32>
    %59 = arith.select %57, %15, %58 : vector<2x64xi1>, vector<2x64xf32>
    %cst_23 = arith.constant dense<0xFF800000> : vector<2xf32>
    %60 = vector.multi_reduction <maximumf>, %59, %cst_23 [1] : vector<2x64xf32> to vector<2xf32>
    %61 = vector.shape_cast %60 : vector<2xf32> to vector<2x1xf32>
    %62 = vector.shape_cast %61 : vector<2x1xf32> to vector<2x1xf32>
    %63 = vector.broadcast %62 : vector<2x1xf32> to vector<2x64xf32>
    %64 = arith.select %57, %63, %55 : vector<2x64xi1>, vector<2x64xf32>
    %c3_i32 = arith.constant 3 : i32
    %65 = vector.broadcast %c3_i32 : i32 to vector<2x64xi32>
    %66 = arith.cmpi eq, %36, %65 : vector<2x64xi32>
    %cst_24 = arith.constant 0xFF800000 : f32
    %67 = vector.broadcast %cst_24 : f32 to vector<2x64xf32>
    %68 = arith.select %66, %15, %67 : vector<2x64xi1>, vector<2x64xf32>
    %cst_25 = arith.constant dense<0xFF800000> : vector<2xf32>
    %69 = vector.multi_reduction <maximumf>, %68, %cst_25 [1] : vector<2x64xf32> to vector<2xf32>
    %70 = vector.shape_cast %69 : vector<2xf32> to vector<2x1xf32>
    %71 = vector.shape_cast %70 : vector<2x1xf32> to vector<2x1xf32>
    %72 = vector.broadcast %71 : vector<2x1xf32> to vector<2x64xf32>
    %73 = arith.select %66, %72, %64 : vector<2x64xi1>, vector<2x64xf32>
    %74 = arith.subf %15, %73 : vector<2x64xf32>
    %75 = math.exp %74 : vector<2x64xf32>
    %76 = arith.truncf %75 : vector<2x64xf32> to vector<2x64xbf16>
    %c0_26 = arith.constant 0 : index
    %c0_27 = arith.constant 0 : index
    %77 = vector.load %arg6[%c0_26, %c0_27] : memref<64x128xbf16, #tpu.memory_space<vmem>>, vector<64x128xbf16>
    %cst_28 = arith.constant dense<0.000000e+00> : vector<2x128xf32>
    %78 = tpu.matmul %76, %77, %cst_28 {dimension_numbers = #tpu.dot_dimension_numbers<[1], [0], [0], [1], [0, 0, 1, 1], [], []>} : vector<2x64xbf16>, vector<64x128xbf16>, vector<2x128xf32> -> vector<2x128xf32>
    %79 = vector.extract_strided_slice %78 {offsets = [0, 0], sizes = [2, 64], strides = [1, 1]} : vector<2x128xf32> to vector<2x64xf32>
    %80 = vector.extract_strided_slice %78 {offsets = [0, 64], sizes = [2, 64], strides = [1, 1]} : vector<2x128xf32> to vector<2x64xf32>
    %81 = arith.divf %79, %80 : vector<2x64xf32>
    %82 = arith.mulf %18, %81 : vector<2x64xf32>
    %83 = arith.addf %82, %19 : vector<2x64xf32>
    %c0_29 = arith.constant 0 : index
    %c0_30 = arith.constant 0 : index
    %84 = vector.load %arg7[%c0_29, %c0_30] : memref<2x64xf32, #tpu.memory_space<vmem>>, vector<2x64xf32>
    tpu.vector_store %arg7[%c0_29, %c0_30], %83 {strides = array<i32>} : memref<2x64xf32, #tpu.memory_space<vmem>>, vector<2x64xf32>,
    return
  }
  func.func @transform_0(%arg0: i32) -> (i32, i32) {
    %c0_i32 = arith.constant 0 : i32
    %c0_i32_0 = arith.constant 0 : i32
    return %arg0, %c0_i32 : i32, i32
  }
  func.func @transform_1(%arg0: i32) -> (i32, i32) {
    %c0_i32 = arith.constant 0 : i32
    %c0_i32_0 = arith.constant 0 : i32
    %c0_i32_1 = arith.constant 0 : i32
    return %c0_i32, %c0_i32_0 : i32, i32
  }
  func.func @transform_2(%arg0: i32) -> (i32, i32) {
    %c0_i32 = arith.constant 0 : i32
    %c0_i32_0 = arith.constant 0 : i32
    %c0_i32_1 = arith.constant 0 : i32
    return %c0_i32, %c0_i32_0 : i32, i32
  }
  func.func @transform_3(%arg0: i32) -> (i32, i32) {
    %c0_i32 = arith.constant 0 : i32
    %c0_i32_0 = arith.constant 0 : i32
    %c0_i32_1 = arith.constant 0 : i32
    return %c0_i32, %c0_i32_0 : i32, i32
  }
  func.func @transform_4(%arg0: i32) -> (i32, i32) {
    %c0_i32 = arith.constant 0 : i32
    %c0_i32_0 = arith.constant 0 : i32
    %c0_i32_1 = arith.constant 0 : i32
    return %c0_i32, %c0_i32_0 : i32, i32
  }
  func.func @transform_5(%arg0: i32) -> (i32, i32) {
    %c0_i32 = arith.constant 0 : i32
    %c0_i32_0 = arith.constant 0 : i32
    %c0_i32_1 = arith.constant 0 : i32
    return %c0_i32, %c0_i32_0 : i32, i32
  }
  func.func @transform_6(%arg0: i32) -> (i32, i32) {
    %c0_i32 = arith.constant 0 : i32
    %c0_i32_0 = arith.constant 0 : i32
    return %arg0, %c0_i32 : i32, i32
  }
}

</mosaic_0001>

<bundles_post_ra>
// kernel: nc_qrdqn_forward.1
= control target key start
LH: loop header
LB: loop body
LE: loop exit
PB: predicated region body
PF: predicated region fallthrough
CT: control target
= control target key end

     0   :  { %v1231_v1 = vmov 0   ;;  %vm825_vm2 = vcmask 517120   ;;  %vm1233_vm5 = vmmov 0   ;;  %vm884_vm6 = vcmask 523264   ;;  %s1603_s1 = inlined_call_operand.vmem [shape: bf16[128,512], index: 1, kind: input, shape index: {}]   ;;  %s1604_s3 = inlined_call_operand.vmem [shape: bf16[512,192], index: 3, kind: input, shape index: {}]   ;;  %s1605_s0 = inlined_call_operand.vmem [shape: f32[2,128], index: 0, kind: input, shape index: {}]   ;;  %s1606_s2 = inlined_call_operand.vmem [shape: f32[1,512], index: 2, kind: input, shape index: {}]   ;;  %s1607_s4 = inlined_call_operand.vmem [shape: f32[1,192], index: 4, kind: input, shape index: {}]   ;;  %s1608_s5 = inlined_call_operand.vmem [shape: bf16[64,128], index: 5, kind: input, shape index: {}]   ;;  %s1609_s6 = inlined_call_operand.vmem [shape: f32[2,64], index: 6, kind: output, shape index: {}]  }
   0x1   :  { %v1079_v0 = vld [vmem:[%s1603_s1 + $0x4] ss:$16 sps:$4 sm:$0xff]   ;;  %272 = vmatprep.mubr.bf16.mxu0 %v1231_v1  ;;  %313 = vmatprep.mubr.bf16.mxu1 %v1231_v1  ;;  %v1081_v2 = vld [vmem:[%s1603_s1 + $0xc] ss:$16 sps:$4 sm:$0xff]   ;;  %v1083_v3 = vld [vmem:[%s1603_s1] ss:$16 sps:$4 sm:$0xff]  }
   0x2   :  { %240 = vmatprep.subr.bf16.mxu0 %v1079_v0  ;;  %v1084_v4 = vld [vmem:[%s1603_s1 + $0x8] ss:$16 sps:$4 sm:$0xff]   ;;  %281 = vmatprep.subr.bf16.mxu1 %v1081_v2  ;;  %v1085_v5 = vld [vmem:[%s1603_s1 + $0x24] ss:$16 sps:$4 sm:$0xff]   ;;  %v1087_v6 = vld [vmem:[%s1603_s1 + $0x2c] ss:$16 sps:$4 sm:$0xff]  }
   0x3   :  { %241 = vmatpush1.bf16.msra.mxu0 %v1083_v3  ;;  %282 = vmatpush1.bf16.msra.mxu1 %v1084_v4  ;;  %v1089_v7 = vld [vmem:[%s1603_s1 + $0x20] ss:$16 sps:$4 sm:$0xff]   ;;  %v1090_v8 = vld [vmem:[%s1603_s1 + $0x28] ss:$16 sps:$4 sm:$0xff]   ;;  %v1091_v9 = vld [vmem:[%s1603_s1 + $0x44] ss:$16 sps:$4 sm:$0xff]  }
   0x4   :  { %242 = vmatprep.subr.bf16.mxu0 %v1085_v5  ;;  %283 = vmatprep.subr.bf16.mxu1 %v1087_v6  ;;  %v1093_v10 = vld [vmem:[%s1603_s1 + $0x4c] ss:$16 sps:$4 sm:$0xff]   ;;  %v1095_v11 = vld [vmem:[%s1603_s1 + $0x40] ss:$16 sps:$4 sm:$0xff]   ;;  %v1096_v12 = vld [vmem:[%s1603_s1 + $0x48] ss:$16 sps:$4 sm:$0xff]  }
   0x5   :  { %v1097_v13 = vld [vmem:[%s1603_s1 + $0x64] ss:$16 sps:$4 sm:$0xff]   ;;  %v1099_v14 = vld [vmem:[%s1603_s1 + $0x6c] ss:$16 sps:$4 sm:$0xff]   ;;  %v1101_v15 = vld [vmem:[%s1603_s1 + $0x60] ss:$16 sps:$4 sm:$0xff]  }
   0x6   :  { %v1102_v16 = vld [vmem:[%s1603_s1 + $0x68] ss:$16 sps:$4 sm:$0xff]   ;;  %v1103_v17 = vld [vmem:[%s1603_s1 + $0x84] ss:$16 sps:$4 sm:$0xff]   ;;  %v1105_v18 = vld [vmem:[%s1603_s1 + $0x8c] ss:$16 sps:$4 sm:$0xff]  }
   0x7   :  { %243 = vmatpush1.bf16.msra.mxu0 %v1089_v7  ;;  %284 = vmatpush1.bf16.msra.mxu1 %v1090_v8  ;;  %v1107_v19 = vld [vmem:[%s1603_s1 + $0x80] ss:$16 sps:$4 sm:$0xff]   ;;  %v1108_v20 = vld [vmem:[%s1603_s1 + $0x88] ss:$16 sps:$4 sm:$0xff]   ;;  %v1109_v21 = vld [vmem:[%s1603_s1 + $0xa4] ss:$16 sps:$4 sm:$0xff]  }
   0x8   :  { %244 = vmatprep.subr.bf16.mxu0 %v1091_v9  ;;  %285 = vmatprep.subr.bf16.mxu1 %v1093_v10  ;;  %v1111_v22 = vld [vmem:[%s1603_s1 + $0xac] ss:$16 sps:$4 sm:$0xff]   ;;  %v1113_v23 = vld [vmem:[%s1603_s1 + $0xa0] ss:$16 sps:$4 sm:$0xff]   ;;  %v1114_v24 = vld [vmem:[%s1603_s1 + $0xa8] ss:$16 sps:$4 sm:$0xff]  }
   0x9   :  { %v1115_v25 = vld [vmem:[%s1603_s1 + $0xc4] ss:$16 sps:$4 sm:$0xff]   ;;  %v1117_v26 = vld [vmem:[%s1603_s1 + $0xcc] ss:$16 sps:$4 sm:$0xff]   ;;  %v1119_v27 = vld [vmem:[%s1603_s1 + $0xc0] ss:$16 sps:$4 sm:$0xff]  }
   0xa   :  { %v1120_v28 = vld [vmem:[%s1603_s1 + $0xc8] ss:$16 sps:$4 sm:$0xff]   ;;  %v1121_v29 = vld [vmem:[%s1603_s1 + $0xe4] ss:$16 sps:$4 sm:$0xff]   ;;  %v1123_v30 = vld [vmem:[%s1603_s1 + $0xec] ss:$16 sps:$4 sm:$0xff]  }
   0xb   :  { %245 = vmatpush1.bf16.msra.mxu0 %v1095_v11  ;;  %286 = vmatpush1.bf16.msra.mxu1 %v1096_v12  ;;  %v1125_v31 = vld [vmem:[%s1603_s1 + $0xe0] ss:$16 sps:$4 sm:$0xff]   ;;  %v1126_v32 = vld [vmem:[%s1603_s1 + $0xe8] ss:$16 sps:$4 sm:$0xff]   ;;  %v1129_v34 = vld [vmem:[%s1604_s3 + $0x4] ss:$8 sps:$4 sm:$0xff]  }
   0xc   :  { %246 = vmatprep.subr.bf16.mxu0 %v1097_v13  ;;  %287 = vmatprep.subr.bf16.mxu1 %v1099_v14  ;;  %v24_v33 = vld [vmem:[%s1605_s0] sm:$0x3]  ;;  %v1132_v35 = vld [vmem:[%s1604_s3 + $0x104] ss:$8 sps:$4 sm:$0xff]   ;;  %v1135_v39 = vld [vmem:[%s1604_s3 + $0x14] ss:$8 sps:$4 sm:$0xff]  }
   0xd   :  { %v25_v36 = vpack.c.bf16 %v24_v33, %v24_v33  ;;  %v1127_v37 = vld [vmem:[%s1604_s3] ss:$8 sps:$4 sm:$0xff]   ;;  %v1138_v40 = vld [vmem:[%s1604_s3 + $0x114] ss:$8 sps:$4 sm:$0xff]   ;;  %v1133_v41 = vld [vmem:[%s1604_s3 + $0x10] ss:$8 sps:$4 sm:$0xff]  }
   0xe   :  { %v1130_v38 = vld [vmem:[%s1604_s3 + $0x100] ss:$8 sps:$4 sm:$0xff]   ;;  %v1136_v42 = vld [vmem:[%s1604_s3 + $0x110] ss:$8 sps:$4 sm:$0xff]   ;;  %v1141_v43 = vld [vmem:[%s1604_s3 + $0x24] ss:$8 sps:$4 sm:$0xff]  }
   0xf   :  { %247 = vmatpush1.bf16.msra.mxu0 %v1101_v15  ;;  %288 = vmatpush1.bf16.msra.mxu1 %v1102_v16  ;;  %v1144_v44 = vld [vmem:[%s1604_s3 + $0x124] ss:$8 sps:$4 sm:$0xff]   ;;  %v1139_v45 = vld [vmem:[%s1604_s3 + $0x20] ss:$8 sps:$4 sm:$0xff]   ;;  %v1147_v47 = vld [vmem:[%s1604_s3 + $0x34] ss:$8 sps:$4 sm:$0xff]  }
  0x10   :  { %248 = vmatprep.subr.bf16.mxu0 %v1103_v17  ;;  %289 = vmatprep.subr.bf16.mxu1 %v1105_v18  ;;  %v1142_v46 = vld [vmem:[%s1604_s3 + $0x120] ss:$8 sps:$4 sm:$0xff]   ;;  %v1150_v48 = vld [vmem:[%s1604_s3 + $0x134] ss:$8 sps:$4 sm:$0xff]   ;;  %v1145_v49 = vld [vmem:[%s1604_s3 + $0x30] ss:$8 sps:$4 sm:$0xff]  }
  0x11   :  { %v1148_v50 = vld [vmem:[%s1604_s3 + $0x130] ss:$8 sps:$4 sm:$0xff]   ;;  %v1153_v51 = vld [vmem:[%s1604_s3 + $0x44] ss:$8 sps:$4 sm:$0xff]   ;;  %v1151_v53 = vld [vmem:[%s1604_s3 + $0x40] ss:$8 sps:$4 sm:$0xff]  }
  0x12   :  { %v1156_v52 = vld [vmem:[%s1604_s3 + $0x144] ss:$8 sps:$4 sm:$0xff]   ;;  %v1154_v54 = vld [vmem:[%s1604_s3 + $0x140] ss:$8 sps:$4 sm:$0xff]   ;;  %v1159_v55 = vld [vmem:[%s1604_s3 + $0x54] ss:$8 sps:$4 sm:$0xff]  }
  0x13   :  { %249 = vmatpush1.bf16.msra.mxu0 %v1107_v19  ;;  %290 = vmatpush1.bf16.msra.mxu1 %v1108_v20  ;;  %v1162_v56 = vld [vmem:[%s1604_s3 + $0x154] ss:$8 sps:$4 sm:$0xff]   ;;  %v1157_v57 = vld [vmem:[%s1604_s3 + $0x50] ss:$8 sps:$4 sm:$0xff]   ;;  %v1165_v59 = vld [vmem:[%s1604_s3 + $0x64] ss:$8 sps:$4 sm:$0xff]  }
  0x14   :  { %250 = vmatprep.subr.bf16.mxu0 %v1109_v21  ;;  %291 = vmatprep.subr.bf16.mxu1 %v1111_v22  ;;  %v1160_v58 = vld [vmem:[%s1604_s3 + $0x150] ss:$8 sps:$4 sm:$0xff]   ;;  %v1168_v60 = vld [vmem:[%s1604_s3 + $0x164] ss:$8 sps:$4 sm:$0xff]   ;;  %v1163_v61 = vld [vmem:[%s1604_s3 + $0x60] ss:$8 sps:$4 sm:$0xff]  }
  0x15   :  { %v1166_v62 = vld [vmem:[%s1604_s3 + $0x160] ss:$8 sps:$4 sm:$0xff]   ;;  %v1171_v63 = vld [vmem:[%s1604_s3 + $0x74] ss:$8 sps:$4 sm:$0xff]   ;;  %v1169_v1 = vld [vmem:[%s1604_s3 + $0x70] ss:$8 sps:$4 sm:$0xff]  }
  0x16   :  { %v1174_v0 = vld [vmem:[%s1604_s3 + $0x174] ss:$8 sps:$4 sm:$0xff]   ;;  %v1172_v2 = vld [vmem:[%s1604_s3 + $0x170] ss:$8 sps:$4 sm:$0xff]   ;;  %v1177_v3 = vld [vmem:[%s1604_s3 + $0x84] ss:$8 sps:$4 sm:$0xff]  }
  0x17   :  { %251 = vmatpush1.bf16.msra.mxu0 %v1113_v23  ;;  %292 = vmatpush1.bf16.msra.mxu1 %v1114_v24  ;;  %v1180_v4 = vld [vmem:[%s1604_s3 + $0x184] ss:$8 sps:$4 sm:$0xff]   ;;  %v1175_v5 = vld [vmem:[%s1604_s3 + $0x80] ss:$8 sps:$4 sm:$0xff]   ;;  %v1183_v7 = vld [vmem:[%s1604_s3 + $0x94] ss:$8 sps:$4 sm:$0xff]  }
  0x18   :  { %252 = vmatprep.subr.bf16.mxu0 %v1115_v25  ;;  %293 = vmatprep.subr.bf16.mxu1 %v1117_v26  ;;  %v1178_v6 = vld [vmem:[%s1604_s3 + $0x180] ss:$8 sps:$4 sm:$0xff]   ;;  %v1186_v8 = vld [vmem:[%s1604_s3 + $0x194] ss:$8 sps:$4 sm:$0xff]   ;;  %v1181_v9 = vld [vmem:[%s1604_s3 + $0x90] ss:$8 sps:$4 sm:$0xff]  }
  0x19   :  { %v1184_v10 = vld [vmem:[%s1604_s3 + $0x190] ss:$8 sps:$4 sm:$0xff]   ;;  %v1189_v11 = vld [vmem:[%s1604_s3 + $0xa4] ss:$8 sps:$4 sm:$0xff]   ;;  %v1187_v13 = vld [vmem:[%s1604_s3 + $0xa0] ss:$8 sps:$4 sm:$0xff]  }
  0x1a   :  { %v1192_v12 = vld [vmem:[%s1604_s3 + $0x1a4] ss:$8 sps:$4 sm:$0xff]   ;;  %v1190_v14 = vld [vmem:[%s1604_s3 + $0x1a0] ss:$8 sps:$4 sm:$0xff]   ;;  %v1195_v15 = vld [vmem:[%s1604_s3 + $0xb4] ss:$8 sps:$4 sm:$0xff]  }
  0x1b   :  { %253 = vmatpush1.bf16.msra.mxu0 %v1119_v27  ;;  %294 = vmatpush1.bf16.msra.mxu1 %v1120_v28  ;;  %v1198_v16 = vld [vmem:[%s1604_s3 + $0x1b4] ss:$8 sps:$4 sm:$0xff]   ;;  %v1193_v17 = vld [vmem:[%s1604_s3 + $0xb0] ss:$8 sps:$4 sm:$0xff]   ;;  %v1201_v19 = vld [vmem:[%s1604_s3 + $0xc4] ss:$8 sps:$4 sm:$0xff]  }
  0x1c   :  { %254 = vmatprep.subr.bf16.mxu0 %v1121_v29  ;;  %295 = vmatprep.subr.bf16.mxu1 %v1123_v30  ;;  %v1196_v18 = vld [vmem:[%s1604_s3 + $0x1b0] ss:$8 sps:$4 sm:$0xff]   ;;  %v1204_v20 = vld [vmem:[%s1604_s3 + $0x1c4] ss:$8 sps:$4 sm:$0xff]   ;;  %v1199_v21 = vld [vmem:[%s1604_s3 + $0xc0] ss:$8 sps:$4 sm:$0xff]  }
  0x1d   :  { %v1202_v22 = vld [vmem:[%s1604_s3 + $0x1c0] ss:$8 sps:$4 sm:$0xff]   ;;  %v1207_v23 = vld [vmem:[%s1604_s3 + $0xd4] ss:$8 sps:$4 sm:$0xff]   ;;  %v1205_v25 = vld [vmem:[%s1604_s3 + $0xd0] ss:$8 sps:$4 sm:$0xff]  }
  0x1e   :  { %v1210_v24 = vld [vmem:[%s1604_s3 + $0x1d4] ss:$8 sps:$4 sm:$0xff]   ;;  %v1208_v26 = vld [vmem:[%s1604_s3 + $0x1d0] ss:$8 sps:$4 sm:$0xff]   ;;  %v1213_v27 = vld [vmem:[%s1604_s3 + $0xe4] ss:$8 sps:$4 sm:$0xff]  }
  0x1f   :  { %255 = vmatpush1.bf16.msra.mxu0 %v1125_v31  ;;  %296 = vmatpush1.bf16.msra.mxu1 %v1126_v32  ;;  %v1216_v28 = vld [vmem:[%s1604_s3 + $0x1e4] ss:$8 sps:$4 sm:$0xff]   ;;  %v1211_v29 = vld [vmem:[%s1604_s3 + $0xe0] ss:$8 sps:$4 sm:$0xff]   ;;  %v1219_v31 = vld [vmem:[%s1604_s3 + $0xf4] ss:$8 sps:$4 sm:$0xff]  }
  0x20   :  { %726 = vmatprep.subr.bf16.mxu1 %v1129_v34  ;;  %767 = vmatprep.subr.bf16.mxu0 %v1132_v35  ;;  %v1214_v30 = vld [vmem:[%s1604_s3 + $0x1e0] ss:$8 sps:$4 sm:$0xff]   ;;  %v1222_v32 = vld [vmem:[%s1604_s3 + $0x1f4] ss:$8 sps:$4 sm:$0xff]   ;;  %v1217_v33 = vld [vmem:[%s1604_s3 + $0xf0] ss:$8 sps:$4 sm:$0xff]   ;;  %v60_v35 = vlaneseq }
  0x21   :  { %v1220_v34 = vld [vmem:[%s1604_s3 + $0x1f0] ss:$8 sps:$4 sm:$0xff]  }
  0x22   :  { %273 = vmatmul.mubr.bf16.vlgmr.msra.gmra.mrb[0].mxu0 %v25_v36  ;;  %314 = vmatmul.mubr.bf16.vlgmr.msra.gmra.mrb[0].mxu1 %v25_v36  ;;  %v61_v36 = vshrl.u32 %v60_v35, 7 }
  0x23   :  { %727 = vmatpush1.bf16.msra.mxu1 %v1127_v37  ;;  %768 = vmatpush1.bf16.msra.mxu0 %v1130_v38 }
  0x24   :  { %728 = vmatprep.subr.bf16.mxu1 %v1135_v39  ;;  %769 = vmatprep.subr.bf16.mxu0 %v1138_v40  ;;  %v62_v37 = vsub.s32 0, %v61_v36  ;;  %v70_v38 = vsub.s32 2, %v61_v36  ;;  %v58_v39 = vld [vmem:[%s1606_s2] sm:$0xf]  ;;  %v66_v40 = vsub.s32 1, %v61_v36 }
  0x27   :  { %729 = vmatpush1.bf16.msra.mxu1 %v1133_v41  ;;  %770 = vmatpush1.bf16.msra.mxu0 %v1136_v42  ;;  %v74_v41 = vsub.s32 3, %v61_v36  ;;  %v63_v42 = vrot.slane %v58_v39, %v62_v37 }
  0x28   :  { %730 = vmatprep.subr.bf16.mxu1 %v1141_v43  ;;  %771 = vmatprep.subr.bf16.mxu0 %v1144_v44  ;;  %v71_v43 = vrot.slane %v58_v39, %v70_v38  ;;  %v67_v44 = vrot.slane %v58_v39, %v66_v40 }
  0x2b   :  { %731 = vmatpush1.bf16.msra.mxu1 %v1139_v45  ;;  %772 = vmatpush1.bf16.msra.mxu0 %v1142_v46  ;;  %v75_v45 = vrot.slane %v58_v39, %v74_v41 }
  0x2c   :  { %732 = vmatprep.subr.bf16.mxu1 %v1147_v47  ;;  %773 = vmatprep.subr.bf16.mxu0 %v1150_v48 }
  0x2f   :  { %733 = vmatpush1.bf16.msra.mxu1 %v1145_v49  ;;  %774 = vmatpush1.bf16.msra.mxu0 %v1148_v50 }
  0x30   :  { %734 = vmatprep.subr.bf16.mxu1 %v1153_v51  ;;  %775 = vmatprep.subr.bf16.mxu0 %v1156_v52 }
  0x33   :  { %735 = vmatpush1.bf16.msra.mxu1 %v1151_v53  ;;  %776 = vmatpush1.bf16.msra.mxu0 %v1154_v54 }
  0x34   :  { %736 = vmatprep.subr.bf16.mxu1 %v1159_v55  ;;  %777 = vmatprep.subr.bf16.mxu0 %v1162_v56 }
  0x37   :  { %737 = vmatpush1.bf16.msra.mxu1 %v1157_v57  ;;  %778 = vmatpush1.bf16.msra.mxu0 %v1160_v58 }
  0x38   :  { %738 = vmatprep.subr.bf16.mxu1 %v1165_v59  ;;  %779 = vmatprep.subr.bf16.mxu0 %v1168_v60 }
  0x3b   :  { %739 = vmatpush1.bf16.msra.mxu1 %v1163_v61  ;;  %780 = vmatpush1.bf16.msra.mxu0 %v1166_v62 }
  0x3c   :  { %740 = vmatprep.subr.bf16.mxu1 %v1171_v63  ;;  %781 = vmatprep.subr.bf16.mxu0 %v1174_v0 }
  0x3f   :  { %741 = vmatpush1.bf16.msra.mxu1 %v1169_v1  ;;  %782 = vmatpush1.bf16.msra.mxu0 %v1172_v2  ;;  %v394_v2 = vld [vmem:[%s1607_s4] sm:$0x3] }
  0x40   :  { %742 = vmatprep.subr.bf16.mxu1 %v1177_v3  ;;  %783 = vmatprep.subr.bf16.mxu0 %v1180_v4  ;;  %v810_v3 = vand.u32 127, %v60_v35  ;;  %v399_v4 = vrot.slane %v394_v2, %v62_v37 }
  0x43   :  { %743 = vmatpush1.bf16.msra.mxu1 %v1175_v5  ;;  %784 = vmatpush1.bf16.msra.mxu0 %v1178_v6  ;;  %v403_v5 = vrot.slane %v394_v2, %v66_v40  ;;  %v815_v6 = vand.u32 3, %v810_v3 }
  0x44   :  { %744 = vmatprep.subr.bf16.mxu1 %v1183_v7  ;;  %785 = vmatprep.subr.bf16.mxu0 %v1186_v8 }
  0x45   :  { %vm836_vm0 = vcmp.eq.s32.totalorder %v815_v6, 2  ;;  %vm823_vm1 = vcmp.eq.s32.totalorder %v815_v6, 0  ;;  %vm842_vm3 = vcmp.eq.s32.totalorder %v815_v6, 3  ;;  %vm830_vm4 = vcmp.eq.s32.totalorder %v815_v6, 1 }
  0x47   :  { %745 = vmatpush1.bf16.msra.mxu1 %v1181_v9  ;;  %786 = vmatpush1.bf16.msra.mxu0 %v1184_v10 }
  0x48   :  { %746 = vmatprep.subr.bf16.mxu1 %v1189_v11  ;;  %787 = vmatprep.subr.bf16.mxu0 %v1192_v12 }
  0x4b   :  { %747 = vmatpush1.bf16.msra.mxu1 %v1187_v13  ;;  %788 = vmatpush1.bf16.msra.mxu0 %v1190_v14 }
  0x4c   :  { %748 = vmatprep.subr.bf16.mxu1 %v1195_v15  ;;  %789 = vmatprep.subr.bf16.mxu0 %v1198_v16 }
  0x4f   :  { %749 = vmatpush1.bf16.msra.mxu1 %v1193_v17  ;;  %790 = vmatpush1.bf16.msra.mxu0 %v1196_v18 }
  0x50   :  { %750 = vmatprep.subr.bf16.mxu1 %v1201_v19  ;;  %791 = vmatprep.subr.bf16.mxu0 %v1204_v20 }
  0x53   :  { %751 = vmatpush1.bf16.msra.mxu1 %v1199_v21  ;;  %792 = vmatpush1.bf16.msra.mxu0 %v1202_v22 }
  0x54   :  { %752 = vmatprep.subr.bf16.mxu1 %v1207_v23  ;;  %793 = vmatprep.subr.bf16.mxu0 %v1210_v24 }
  0x57   :  { %753 = vmatpush1.bf16.msra.mxu1 %v1205_v25  ;;  %794 = vmatpush1.bf16.msra.mxu0 %v1208_v26 }
  0x58   :  { %754 = vmatprep.subr.bf16.mxu1 %v1213_v27  ;;  %795 = vmatprep.subr.bf16.mxu0 %v1216_v28  ;;  %v1223_v27 = vld [vmem:[%s1608_s5] sm:$0xff]   ;;  %v1232_v28 = vmov 0.0  }
  0x5b   :  { %755 = vmatpush1.bf16.msra.mxu1 %v1211_v29  ;;  %796 = vmatpush1.bf16.msra.mxu0 %v1214_v30  ;;  %v1224_v29 = vld [vmem:[%s1608_s5 + $0x8] sm:$0xff]   ;;  %v1225_v30 = vld [vmem:[%s1608_s5 + $0x10] sm:$0xff]  }
  0x5c   :  { %756 = vmatprep.subr.bf16.mxu1 %v1219_v31  ;;  %797 = vmatprep.subr.bf16.mxu0 %v1222_v32  ;;  %v1226_v31 = vld [vmem:[%s1608_s5 + $0x18] sm:$0xff]   ;;  %s1234_s5 = smov 64  }
  0x5f   :  { %757 = vmatpush1.bf16.msra.mxu1 %v1217_v33  ;;  %798 = vmatpush1.bf16.msra.mxu0 %v1220_v34 }
  0x60   :  { %1059 = vmatprep.subr.bf16.mxu1 %v1232_v28 }
  0xf5   :  { %v274_v46 = vpop.f32.mrb[0].mxu0  ;;  %v315_v47 = vpop.f32.mrb[0].mxu1 }
  0xf6   :  { %v275_v48 = vadd.f32 %v274_v46, %v63_v42  ;;  %v316_v49 = vadd.f32 %v315_v47, %v71_v43  ;;  %v276_v50 = vpop.f32.mrb[1].mxu0  ;;  %v317_v51 = vpop.f32.mrb[1].mxu1 }
  0xf7   :  { %v277_v52 = vadd.f32 %v276_v50, %v67_v44  ;;  %v318_v53 = vadd.f32 %v317_v51, %v75_v45  ;;  %v278_v54 = vpop.f32.mrb[2].mxu0  ;;  %v319_v55 = vpop.f32.mrb[2].mxu1 }
  0xf8   :  { %v322_v56 = vmax.f32 %v275_v48, 0.0  ;;  %v324_v57 = vmax.f32 %v316_v49, 0.0  ;;  %v279_v58 = vpop.f32.mrb[3].mxu0  ;;  %v320_v59 = vpop.f32.mrb[3].mxu1 }
  0xf9   :  { %v323_v60 = vmax.f32 %v277_v52, 0.0  ;;  %v325_v61 = vmax.f32 %v318_v53, 0.0 }
  0xfa   :  { %v328_v62 = vpack.c.bf16 %v324_v57, %v324_v57  ;;  %v326_v1 = vpack.c.bf16 %v322_v56, %v322_v56 }
  0xfb   :  { %v327_v63 = vpack.c.bf16 %v323_v60, %v323_v60  ;;  %v329_v0 = vpack.c.bf16 %v325_v61, %v325_v61 }
  0xfd   :  { %758 = vmatprep.mubr.bf16.mxu1 %v327_v63  ;;  %799 = vmatprep.mubr.bf16.mxu0 %v329_v0 }
  0xfe   :  { %759 = vmatmul.mubr.bf16.vlgmr.msra.gmra.mrb[4].mxu1 %v326_v1  ;;  %800 = vmatmul.mubr.bf16.vlgmr.msra.gmra.mrb[4].mxu0 %v328_v62 }
  0xff   :  { %1060 = vmatpush3.bf16.msra.mxu1 %v1223_v27  ;;  %1067 = vmatprep.mubr.msk.bf16.mxu1 %vm1233_vm5, %v1232_v28 }
 0x100   :  { %1061 = vmatprep.subr.bf16.mxu1 %v1232_v28 }
 0x103   :  { %1062 = vmatpush3.bf16.msra.mxu1 %v1224_v29 }
 0x104   :  { %1063 = vmatprep.subr.bf16.mxu1 %v1232_v28 }
 0x107   :  { %1064 = vmatpush3.bf16.msra.mxu1 %v1225_v30 }
 0x108   :  { %1065 = vmatprep.subr.bf16.mxu1 %v1232_v28 }
 0x10b   :  { %1066 = vmatpush3.bf16.msra.mxu1 %v1226_v31 }
 0x1d1   :  { %v760_v7 = vpop.f32.mrb[4].mxu1  ;;  %v801_v8 = vpop.f32.mrb[4].mxu0 }
 0x1d2   :  { %v761_v9 = vadd.f32 %v760_v7, %v399_v4  ;;  %v762_v10 = vpop.f32.mrb[5].mxu1  ;;  %v803_v11 = vpop.f32.mrb[5].mxu0 }
 0x1d3   :  { %v763_v12 = vadd.f32 %v762_v10, %v403_v5  ;;  %v764_v13 = vpop.f32.mrb[6].mxu1  ;;  %v805_v14 = vpop.f32.mrb[6].mxu0 }
 0x1d4   :  { %v1567_v15 = vadd.f32 %v801_v8, %v761_v9  ;;  %v765_v16 = vpop.f32.mrb[7].mxu1  ;;  %v806_v17 = vpop.f32.mrb[7].mxu0 }
 0x1d5   :  { %v804_v18 = vadd.f32 %v803_v11, %v763_v12 }
 0x1d6   :  { %v837_v19 = vsel %vm836_vm0, %v1567_v15, -inf  ;;  %v824_v20 = vsel %vm823_vm1, %v1567_v15, -inf  ;;  %v843_v23 = vsel %vm842_vm3, %v1567_v15, -inf  ;;  %v831_v24 = vsel %vm830_vm4, %v1567_v15, -inf }
 0x1d7   :  { %v838_v21 = vsel %vm825_vm2, %v837_v19, -inf  ;;  %v826_v22 = vsel %vm825_vm2, %v824_v20, -inf  ;;  %v844_v25 = vsel %vm825_vm2, %v843_v23, -inf  ;;  %v832_v26 = vsel %vm825_vm2, %v831_v24, -inf }
 0x1d8   :  { %839 = vmax.xlane.f32.xlu1 %v838_v21  ;;  %827 = vmax.xlane.f32.xlu0 %v826_v22  ;;  %v808_v52 = vmax.f32 %v1567_v15, 0.0 }
 0x1dc   :  { %845 = vmax.xlane.f32.xlu1 %v844_v25  ;;  %833 = vmax.xlane.f32.xlu0 %v832_v26 }
 0x265   :  { %v840_v32 = vpop.xlane.xlu1 %839  ;;  %v828_v33 = vpop.xlane.xlu0 %827 }
 0x266   :  { %v829_v34 = vsel %vm823_vm1, %v828_v33, 0.0 }
 0x269   :  { %v834_v35 = vpop.xlane.xlu0 %833  ;;  %v846_v37 = vpop.xlane.xlu1 %845 }
 0x26a   :  { %v835_v36 = vsel %vm830_vm4, %v834_v35, %v829_v34 }
 0x26b   :  { %v841_v38 = vsel %vm836_vm0, %v840_v32, %v835_v36 }
 0x26c   :  { %v847_v39 = vsel %vm842_vm3, %v846_v37, %v841_v38 }
 0x26d   :  { %v848_v40 = vsub.f32 %v1567_v15, %v847_v39 }
 0x26f   :  { %v849_v41 = vmul.f32 1.442695, %v848_v40 }
 0x271   :  { %1227 = vpow2.f32 %v849_v41 }
 0x27b   :  { %v1228_v42 = vpop.eup %1227 }
 0x27c   :  { %v851_v43 = vpack.c.bf16 %v1228_v42, %v1228_v42 }
 0x27e   :  { %1068 = vmatmul.mubr.msk.bf16.vlgmr.msra.gmra.mrb[8].mxu1 %vm884_vm6, %v851_v43 }
 0x351   :  { %v922_v44 = vpop.f32.mrb[8].mxu1 }
 0x352   :  { %929 = vrot.lane.b32.xlu0 %v922_v44, %s1234_s5  ;;  %v1069_v45 = vpop.f32.mrb[9].mxu1 }
 0x353   :  { %v925_v46 = vpop.f32.mrb[10].mxu1 }
 0x354   :  { %v1070_v47 = vpop.f32.mrb[11].mxu1 }
 0x3c4   :  { %v930_v48 = vpop.permute.xlu0 %929 }
 0x3c5   :  { %1229 = vrcp.f32 %v930_v48 }
 0x3cf   :  { %v1230_v49 = vpop.eup %1229 }
 0x3d0   :  { %v933_v50 = vmul.f32 %v1230_v49, %v922_v44 }
 0x3d2   :  { %935 = vrot.lane.b32.xlu1 %v933_v50, %s1234_s5 }
 0x3d6   :  { %940 = vrot.lane.b32.xlu1 %v804_v18, %s1234_s5 }
 0x444   :  { %v936_v51 = vpop.permute.xlu1 %935 }
 0x445   :  { %v938_v53 = vmul.f32 %v936_v51, %v808_v52 }
 0x448   :  { %v941_v54 = vpop.permute.xlu1 %940 }
 0x449   :  { %v943_v55 = vadd.f32 %v941_v54, %v938_v53 }
 0x44b   :  { %945 = vrot.lane.b32.xlu1 %v943_v55, %s1234_s5 }
 0x4bd   :  { %v946_v56 = vpop.permute.xlu1 %945 }
 0x4be   :  { %948 = vst.msk [vmem:[%s1609_s6] sm:$0x3] %vm825_vm2, %v946_v56 }

</bundles_post_ra>
